<compile_context>
chip_gen: v6e
topology: v6e:2x2x1
jax: 0.10.0
libtpu: 0.0.40
codegen_flags: <defaults>
</compile_context>

<pallas_src>
import functools
import math

import jax
import jax.numpy as jnp
from jax import lax
from jax.experimental import pallas as pl
from jax.experimental.pallas import tpu as pltpu

IN_DIM = 15
HIDDEN_1 = 16
HIDDEN_2 = 8
OUT_DIM = 1

LANE = 128          # vreg lane width
MAX_BLOCK = 16384   # keeps the double-buffered (blk, 15) input block <= 16 MiB of VMEM
MIN_SPLIT = 2048    # batches at least this big always get >= 2 grid blocks (dual-TC v7x)


def _round_up(n, m):
    return ((n + m - 1) // m) * m


def _cdiv(a, b):
    return (a + b - 1) // b


def _choose_block(batch, block_b):
    """Batch-tile size: multiple of 128 lanes, VMEM-capped, >=2 blocks for big batches."""
    b128 = _round_up(batch, LANE)
    blk = max(LANE, min(_round_up(block_b, LANE), MAX_BLOCK, b128))
    # Give the "parallel" grid axis at least two blocks when there is enough batch,
    # so both v7x TensorCores get work (harmless on single-TC v5e/v6e).
    if b128 >= MIN_SPLIT and _cdiv(b128, blk) < 2:
        blk = _round_up(_cdiv(b128, 2), LANE)
    return blk


def _mlp_kernel(x_ref, w1_ref, b1_ref, w2_ref, b2_ref, w3_ref, b3_ref, o_ref):
    # x_ref : (blk, 15)  -- native row-major tile, contiguous DMA from HBM.
    # wN_ref: (out, in) PyTorch-style weights; bN_ref: (out, 1).
    # o_ref : (1, blk)   -- batch on lanes: lane-dense, unmasked vector stores.
    x = x_ref[...]

    # Layer 1 as an "NT" matmul (contract the last dim of both operands, exactly the
    # q @ k^T pattern): the MXU handles the implicit transpose of x, and h1 is emitted
    # already batch-on-lanes with N = blk (full output-lane utilization).
    h1 = lax.dot_general(
        w1_ref[...], x, (((1,), (1,)), ((), ())),
        preferred_element_type=jnp.float32,
    ) + b1_ref[...]                       # (16, blk)
    h1 = jnp.maximum(h1, 0.0)

    h2 = jnp.dot(w2_ref[...], h1, preferred_element_type=jnp.float32) + b2_ref[...]
    h2 = jnp.maximum(h2, 0.0)             # (8, blk)

    z = jnp.dot(w3_ref[...], h2, preferred_element_type=jnp.float32) + b3_ref[...]
    o_ref[...] = jax.nn.sigmoid(z).astype(o_ref.dtype)   # (1, blk)


@functools.partial(jax.jit, static_argnames=("block_b",))
def score_model_forward(x, params, block_b=8192):
    """x: (B, 15) float32 -> (B, 1) float32, matching ScoreModel.forward."""
    w1, b1, w2, b2, w3, b3 = params
    B = x.shape[0]

    blk = _choose_block(B, block_b)
    num_blocks = _cdiv(B, blk)   # ragged last block: input reads padded, output stores masked

    full2d = lambda shape: pl.BlockSpec(shape, lambda i: (0, 0))

    # Advisory cost hint: tiny, HBM-bandwidth-bound custom call.
    flops = 2 * B * (IN_DIM * HIDDEN_1 + HIDDEN_1 * HIDDEN_2 + HIDDEN_2 * OUT_DIM)
    bytes_accessed = B * (IN_DIM + OUT_DIM) * 4 + sum(int(p.size) * 4 for p in params)
    cost = pl.CostEstimate(flops=flops, transcendentals=B, bytes_accessed=bytes_accessed)

    out = pl.pallas_call(
        _mlp_kernel,
        out_shape=jax.ShapeDtypeStruct((OUT_DIM, B), jnp.float32),
        grid=(num_blocks,),
        in_specs=[
            pl.BlockSpec((blk, IN_DIM), lambda i: (i, 0)),   # contiguous row tile of x
            full2d((HIDDEN_1, IN_DIM)),
            full2d((HIDDEN_1, 1)),
            full2d((HIDDEN_2, HIDDEN_1)),
            full2d((HIDDEN_2, 1)),
            full2d((OUT_DIM, HIDDEN_2)),
            full2d((OUT_DIM, 1)),
        ],
        out_specs=pl.BlockSpec((OUT_DIM, blk), lambda i: (0, i)),   # lane-dense output
        compiler_params=pltpu.CompilerParams(
            dimension_semantics=("parallel",),
        ),
        cost_estimate=cost,
    )(x, w1, b1, w2, b2, w3, b3)

    # (1, B) -> (B, 1): pure reshape-style view, no transpose copy.
    return out[0, :, None]


def init_params(key):
    """Deterministic init mimicking nn.Linear's uniform(-1/sqrt(fan_in), 1/sqrt(fan_in)).

    Weights are PyTorch-style (out_features, in_features); biases are (out_features, 1).
    """

    def linear(key, fan_in, fan_out):
        kw, kb = jax.random.split(key)
        bound = 1.0 / math.sqrt(fan_in)
        w = jax.random.uniform(kw, (fan_out, fan_in), jnp.float32, -bound, bound)
        b = jax.random.uniform(kb, (fan_out, 1), jnp.float32, -bound, bound)
        return w, b

    k1, k2, k3 = jax.random.split(key, 3)
    w1, b1 = linear(k1, IN_DIM, HIDDEN_1)
    w2, b2 = linear(k2, HIDDEN_1, HIDDEN_2)
    w3, b3 = linear(k3, HIDDEN_2, OUT_DIM)
    return (w1, b1, w2, b2, w3, b3)


def reference_forward(x, params):
    w1, b1, w2, b2, w3, b3 = params
    h1 = jnp.maximum(x @ w1.T + b1.T, 0.0)
    h2 = jnp.maximum(h1 @ w2.T + b2.T, 0.0)
    return jax.nn.sigmoid(h2 @ w3.T + b3.T)


if __name__ == "__main__":
    key = jax.random.PRNGKey(0)
    k_params, k_x1, k_x2, k_x3 = jax.random.split(key, 4)

    params = init_params(k_params)

    def check(name, x, **kw):
        out = jax.block_until_ready(score_model_forward(x, params, **kw))
        ref = reference_forward(x, params)
        assert out.shape == (x.shape[0], OUT_DIM), f"bad shape ({name})"
        assert jnp.allclose(out, ref, atol=1e-5, rtol=1e-5), f"mismatch vs reference ({name})"

    # Small batch: single ragged block (16 of 128 rows valid, masked output store).
    check("B=16", jax.random.normal(k_x1, (16, IN_DIM), dtype=jnp.float32))

    # Non-divisible batch with several grid steps and a ragged last block.
    check("B=515, blk=256", jax.random.normal(k_x2, (515, IN_DIM), dtype=jnp.float32),
          block_b=256)

    # Larger batch on the default path (auto-split into >= 2 blocks for dual-TC v7x).
    check("B=4099", jax.random.normal(k_x3, (4099, IN_DIM), dtype=jnp.float32))

    print("KERNEL_OK")
</pallas_src>

<mosaic_0001>
module attributes {stable_mosaic.version = 11 : i64} {
  func.func @_mlp_kernel(%arg0: i32, %arg1: memref<128x15xf32, #tpu.memory_space<vmem>>, %arg2: memref<16x15xf32, #tpu.memory_space<vmem>>, %arg3: memref<16x1xf32, #tpu.memory_space<vmem>>, %arg4: memref<8x16xf32, #tpu.memory_space<vmem>>, %arg5: memref<8x1xf32, #tpu.memory_space<vmem>>, %arg6: memref<1x8xf32, #tpu.memory_space<vmem>>, %arg7: memref<1x1xf32, #tpu.memory_space<vmem>>, %arg8: memref<1x128xf32, #tpu.memory_space<vmem>>) attributes {dimension_semantics = [#tpu.dimension_semantics<parallel>], iteration_bounds = array<i64: 1>, scalar_prefetch = 0 : i64, scratch_operands = 0 : i64, tpu.core_type = #tpu.core_type<tc>, window_params = [{transform_indices = @transform_0, window_bounds = array<i64: 128, 15>}, {pipeline_mode = #tpu.pipeline_mode<synchronous>, transform_indices = @transform_1, window_bounds = array<i64: 16, 15>}, {pipeline_mode = #tpu.pipeline_mode<synchronous>, transform_indices = @transform_2, window_bounds = array<i64: 16, 1>}, {pipeline_mode = #tpu.pipeline_mode<synchronous>, transform_indices = @transform_3, window_bounds = array<i64: 8, 16>}, {pipeline_mode = #tpu.pipeline_mode<synchronous>, transform_indices = @transform_4, window_bounds = array<i64: 8, 1>}, {pipeline_mode = #tpu.pipeline_mode<synchronous>, transform_indices = @transform_5, window_bounds = array<i64: 1, 8>}, {pipeline_mode = #tpu.pipeline_mode<synchronous>, transform_indices = @transform_6, window_bounds = array<i64: 1, 1>}, {transform_indices = @transform_7, window_bounds = array<i64: 1, 128>}]} {
    %c0 = arith.constant 0 : index
    %c0_0 = arith.constant 0 : index
    %0 = vector.load %arg1[%c0, %c0_0] : memref<128x15xf32, #tpu.memory_space<vmem>>, vector<128x15xf32>
    %c0_1 = arith.constant 0 : index
    %c0_2 = arith.constant 0 : index
    %1 = vector.load %arg2[%c0_1, %c0_2] : memref<16x15xf32, #tpu.memory_space<vmem>>, vector<16x15xf32>
    %cst = arith.constant dense<0.000000e+00> : vector<16x128xf32>
    %2 = tpu.matmul %1, %0, %cst {dimension_numbers = #tpu.dot_dimension_numbers<[1], [1], [0], [0], [0, 0, 1, 0], [], []>} : vector<16x15xf32>, vector<128x15xf32>, vector<16x128xf32> -> vector<16x128xf32>
    %c0_3 = arith.constant 0 : index
    %c0_4 = arith.constant 0 : index
    %3 = vector.load %arg3[%c0_3, %c0_4] : memref<16x1xf32, #tpu.memory_space<vmem>>, vector<16x1xf32>
    %4 = vector.broadcast %3 : vector<16x1xf32> to vector<16x128xf32>
    %5 = arith.addf %2, %4 : vector<16x128xf32>
    %cst_5 = arith.constant 0.000000e+00 : f32
    %6 = vector.broadcast %cst_5 : f32 to vector<16x128xf32>
    %7 = arith.maximumf %5, %6 : vector<16x128xf32>
    %c0_6 = arith.constant 0 : index
    %c0_7 = arith.constant 0 : index
    %8 = vector.load %arg4[%c0_6, %c0_7] : memref<8x16xf32, #tpu.memory_space<vmem>>, vector<8x16xf32>
    %cst_8 = arith.constant dense<0.000000e+00> : vector<8x128xf32>
    %9 = tpu.matmul %8, %7, %cst_8 {dimension_numbers = #tpu.dot_dimension_numbers<[1], [0], [0], [1], [0, 0, 1, 1], [], []>} : vector<8x16xf32>, vector<16x128xf32>, vector<8x128xf32> -> vector<8x128xf32>
    %c0_9 = arith.constant 0 : index
    %c0_10 = arith.constant 0 : index
    %10 = vector.load %arg5[%c0_9, %c0_10] : memref<8x1xf32, #tpu.memory_space<vmem>>, vector<8x1xf32>
    %11 = vector.broadcast %10 : vector<8x1xf32> to vector<8x128xf32>
    %12 = arith.addf %9, %11 : vector<8x128xf32>
    %cst_11 = arith.constant 0.000000e+00 : f32
    %13 = vector.broadcast %cst_11 : f32 to vector<8x128xf32>
    %14 = arith.maximumf %12, %13 : vector<8x128xf32>
    %c0_12 = arith.constant 0 : index
    %c0_13 = arith.constant 0 : index
    %15 = vector.load %arg6[%c0_12, %c0_13] : memref<1x8xf32, #tpu.memory_space<vmem>>, vector<1x8xf32>
    %cst_14 = arith.constant dense<0.000000e+00> : vector<1x128xf32>
    %16 = tpu.matmul %15, %14, %cst_14 {dimension_numbers = #tpu.dot_dimension_numbers<[1], [0], [0], [1], [0, 0, 1, 1], [], []>} : vector<1x8xf32>, vector<8x128xf32>, vector<1x128xf32> -> vector<1x128xf32>
    %c0_15 = arith.constant 0 : index
    %c0_16 = arith.constant 0 : index
    %17 = vector.load %arg7[%c0_15, %c0_16] : memref<1x1xf32, #tpu.memory_space<vmem>>, vector<1x1xf32>
    %18 = vector.broadcast %17 : vector<1x1xf32> to vector<1x128xf32>
    %19 = arith.addf %16, %18 : vector<1x128xf32>
    %20 = arith.negf %19 : vector<1x128xf32>
    %21 = math.exp %20 : vector<1x128xf32>
    %cst_17 = arith.constant 1.000000e+00 : f32
    %22 = vector.broadcast %cst_17 : f32 to vector<1x128xf32>
    %23 = arith.addf %22, %21 : vector<1x128xf32>
    %24 = arith.divf %22, %23 : vector<1x128xf32>
    %c0_18 = arith.constant 0 : index
    %c0_19 = arith.constant 0 : index
    %25 = vector.load %arg8[%c0_18, %c0_19] : memref<1x128xf32, #tpu.memory_space<vmem>>, vector<1x128xf32>
    tpu.vector_store %arg8[%c0_18, %c0_19], %24 {strides = array<i32>} : memref<1x128xf32, #tpu.memory_space<vmem>>, vector<1x128xf32>,
    return
  }
  func.func @transform_0(%arg0: i32) -> (i32, i32) {
    %c0_i32 = arith.constant 0 : i32
    %c0_i32_0 = arith.constant 0 : i32
    return %arg0, %c0_i32 : i32, i32
  }
  func.func @transform_1(%arg0: i32) -> (i32, i32) {
    %c0_i32 = arith.constant 0 : i32
    %c0_i32_0 = arith.constant 0 : i32
    %c0_i32_1 = arith.constant 0 : i32
    return %c0_i32, %c0_i32_0 : i32, i32
  }
  func.func @transform_2(%arg0: i32) -> (i32, i32) {
    %c0_i32 = arith.constant 0 : i32
    %c0_i32_0 = arith.constant 0 : i32
    %c0_i32_1 = arith.constant 0 : i32
    return %c0_i32, %c0_i32_0 : i32, i32
  }
  func.func @transform_3(%arg0: i32) -> (i32, i32) {
    %c0_i32 = arith.constant 0 : i32
    %c0_i32_0 = arith.constant 0 : i32
    %c0_i32_1 = arith.constant 0 : i32
    return %c0_i32, %c0_i32_0 : i32, i32
  }
  func.func @transform_4(%arg0: i32) -> (i32, i32) {
    %c0_i32 = arith.constant 0 : i32
    %c0_i32_0 = arith.constant 0 : i32
    %c0_i32_1 = arith.constant 0 : i32
    return %c0_i32, %c0_i32_0 : i32, i32
  }
  func.func @transform_5(%arg0: i32) -> (i32, i32) {
    %c0_i32 = arith.constant 0 : i32
    %c0_i32_0 = arith.constant 0 : i32
    %c0_i32_1 = arith.constant 0 : i32
    return %c0_i32, %c0_i32_0 : i32, i32
  }
  func.func @transform_6(%arg0: i32) -> (i32, i32) {
    %c0_i32 = arith.constant 0 : i32
    %c0_i32_0 = arith.constant 0 : i32
    %c0_i32_1 = arith.constant 0 : i32
    return %c0_i32, %c0_i32_0 : i32, i32
  }
  func.func @transform_7(%arg0: i32) -> (i32, i32) {
    %c0_i32 = arith.constant 0 : i32
    %c0_i32_0 = arith.constant 0 : i32
    return %c0_i32, %arg0 : i32, i32
  }
}

</mosaic_0001>

<bundles_post_ra>
// kernel: score_model_forward.1
= control target key start
LH: loop header
LB: loop body
LE: loop exit
PB: predicated region body
PF: predicated region fallthrough
CT: control target
= control target key end

     0   :  { %s697_s0 = inlined_call_operand.vmem [shape: f32[16,15], index: 0, kind: input, shape index: {}]   ;;  %s698_s1 = inlined_call_operand.hbm [shape: f32[16,15], index: 1, kind: input, shape index: {}]   ;;  %s699_s2 = inlined_call_operand.vmem [shape: f32[16,1], index: 2, kind: input, shape index: {}]   ;;  %s700_s3 = inlined_call_operand.vmem [shape: f32[8,16], index: 3, kind: input, shape index: {}]   ;;  %s701_s4 = inlined_call_operand.vmem [shape: f32[8,1], index: 4, kind: input, shape index: {}]   ;;  %s702_s5 = inlined_call_operand.vmem [shape: f32[1,8], index: 5, kind: input, shape index: {}]   ;;  %s703_s6 = inlined_call_operand.<no memory space> [shape: f32[1,1], index: 6, kind: input, shape index: {}]   ;;  %s704_s7 = inlined_call_operand.hbm [shape: f32[1,16], index: 7, kind: output, shape index: {}]  }
   0x1   :  { %v12_v0 = vstv %s703_s6 }
   0x2   :  { %13 = vst [vmem:[#allocation2] sm:$0x1] %v12_v0 }
   0x3   :  { %14 = vsyncpa [#allocation4], 0 }
   0x4   :  { %15 = vsyncpa [#allocation5], 0  ;;  %s542_s26 = smov [#allocation3]  }
   0x5   :  { %s23_s27 = sshll.u32 %s542_s26, 4  ;;  %s24_s27 = int_to_ptr.vmem [resolvable:$true] %s23_s27 }
   0x6   :  { %s506_s28 = scalar_lea.vmem %s24_s27, 256  ;;  %p511_p1 = scmp.lt.s32.totalorder %s24_s27, %s24_s27 }
   0x7   :  { %p507_p0 = scmp.ne.s32.totalorder %s24_s27, %s506_s28  ;;  %p512_p2 = scmp.lt.s32.totalorder %s506_s28, %s506_s28 }
   0x9   :  { %p513_p3 = por %p512_p2, %p511_p1 }
   0xb   :  { %p514_p4 = pnand %p513_p3, %p507_p0 }
   0xd   :  { %517 = shalt.err (!%p514_p4)
}
   0xe   :  { %s543_s29 = smov 128   ;;  %s544_s30 = smov 8  }
   0xf   :  { %29 = dma.hbm_to_vmem [thread:$0]  %s698_s1, 256, %s24_s27, [#allocation4], %s543_s29, %s543_s29, %s544_s30  }
  0x10   :  { %538 = dma.done.wait [#allocation4], 256  }
  0x11   :  { %539 = vsyncadd [#allocation4], 4294967040  ;;  %v545_v1 = vmov 0   ;;  %vm73_vm0 = vcmask 121856   ;;  %v58_v2 = vld [vmem:[%s697_s0 + $0x78] sm:$0xff]  ;;  %v57_v3 = vld [vmem:[%s697_s0 + $0x70] sm:$0xff]  ;;  %v294_v40 = vlaneseq }
  0x12   :  { %492 = vset.pattern.permute.xlu0 %v545_v1  ;;  %493 = vset.pattern.permute.xlu1 %v545_v1  ;;  %v56_v4 = vld [vmem:[%s697_s0 + $0x68] sm:$0xff]  ;;  %v55_v7 = vld [vmem:[%s697_s0 + $0x60] sm:$0xff]  ;;  %v54_v9 = vld [vmem:[%s697_s0 + $0x58] sm:$0xff]  ;;  %v546_v22 = vmov 0.0   ;;  %vm547_vm1 = vmmov 0   ;;  %vm212_vm2 = vcmask 130048  }
  0x13   :  { %438 = vmatprep.subr.msk.mxu0 %vm73_vm0, %v58_v2  ;;  %v59_v5 = vld [vmem:[#allocation3] sm:$0xff]  ;;  %v53_v10 = vld [vmem:[%s697_s0 + $0x50] sm:$0xff]  ;;  %v50_v13 = vld [vmem:[%s697_s0 + $0x38] sm:$0xff]  ;;  %473 = vmatprep.subr.mxu1 %v546_v22  ;;  %vm298_vm3 = vcmask 64512   ;;  %v295_v41 = vshrl.u32 %v294_v40, 7 }
  0x14   :  { %439 = vmatpush3.xpose.msk.msra.mxu0 %vm73_vm0, %v58_v2  ;;  %470 = vmatprep.mubr.msk.f32.mxu0 %vm73_vm0, %v59_v5  ;;  %v62_v6 = vld [vmem:[%s699_s2 + $0x8] sm:$0xff]  ;;  %v61_v8 = vld [vmem:[%s699_s2] sm:$0xff]  ;;  %v49_v14 = vld [vmem:[%s697_s0 + $0x30] sm:$0xff] }
  0x15   :  { %440 = vmatprep.subr.msk.mxu0 %vm73_vm0, %v57_v3  ;;  %70 = vperm.xlu0 %492, %v62_v6   ;;  %v52_v11 = vld [vmem:[%s697_s0 + $0x48] sm:$0xff]  ;;  %v51_v12 = vld [vmem:[%s697_s0 + $0x40] sm:$0xff]  ;;  %v46_v17 = vld [vmem:[%s697_s0 + $0x18] sm:$0xff]  ;;  %v296_v42 = vsub.s32 0, %v295_v41 }
  0x16   :  { %v48_v15 = vld [vmem:[%s697_s0 + $0x28] sm:$0xff]  ;;  %v47_v16 = vld [vmem:[%s697_s0 + $0x20] sm:$0xff]  ;;  %v45_v18 = vld [vmem:[%s697_s0 + $0x10] sm:$0xff]  ;;  %477 = vmatprep.mubr.msk.f32.mxu1 %vm547_vm1, %v546_v22 }
  0x17   :  { %v44_v19 = vld [vmem:[%s697_s0 + $0x8] sm:$0xff]  ;;  %v43_v20 = vld [vmem:[%s697_s0] sm:$0xff] }
  0x18   :  { %441 = vmatpush3.xpose.msk.msra.mxu0 %vm73_vm0, %v57_v3  ;;  %v60_v21 = vld [vmem:[#allocation3 + $0x8] sm:$0xff]  ;;  %v206_v23 = vld [vmem:[%s701_s4] sm:$0xff] }
  0x19   :  { %442 = vmatprep.subr.msk.mxu0 %vm73_vm0, %v56_v4  ;;  %65 = vperm.xlu0 %492, %v61_v8   ;;  %v288_v24 = vld [vmem:[#allocation2] sm:$0x1] }
  0x1a   :  { %209 = vperm.xlu1 %493, %v206_v23   ;;  %v205_v33 = vld [vmem:[%s700_s3] sm:$0xff]  ;;  %s548_s3 = smov [#allocation6]  }
  0x1b   :  { %v287_v39 = vld [vmem:[%s702_s5] sm:$0x1]  ;;  %s385_s22 = sshll.u32 %s548_s3, 4  ;;  %s386_s22 = int_to_ptr.vmem [resolvable:$true] %s385_s22 }
  0x1c   :  { %443 = vmatpush3.xpose.msk.msra.mxu0 %vm73_vm0, %v56_v4  ;;  %s518_s5 = scalar_lea.vmem %s386_s22, 16  ;;  %s522_s23 = scalar_lea.vmem %s386_s22, 32 }
  0x1d   :  { %444 = vmatprep.subr.msk.mxu0 %vm73_vm0, %v55_v7  ;;  %p519_p5 = scmp.ne.s32.totalorder %s386_s22, %s518_s5  ;;  %p523_p6 = scmp.lt.s32.totalorder %s386_s22, %s386_s22 }
  0x1e   :  { %291 = vperm.xlu1 %493, %v288_v24   ;;  %p524_p7 = scmp.lt.s32.totalorder %s522_s23, %s518_s5 }
  0x20   :  { %445 = vmatpush3.xpose.msk.msra.mxu0 %vm73_vm0, %v55_v7  ;;  %p525_p8 = por %p524_p7, %p523_p6 }
  0x21   :  { %446 = vmatprep.subr.msk.mxu0 %vm73_vm0, %v54_v9 }
  0x22   :  { %p526_p9 = pnand %p525_p8, %p519_p5 }
  0x24   :  { %447 = vmatpush3.xpose.msk.msra.mxu0 %vm73_vm0, %v54_v9 }
  0x25   :  { %448 = vmatprep.subr.msk.mxu0 %vm73_vm0, %v53_v10 }
  0x28   :  { %449 = vmatpush3.xpose.msk.msra.mxu0 %vm73_vm0, %v53_v10 }
  0x29   :  { %450 = vmatprep.subr.msk.mxu0 %vm73_vm0, %v52_v11 }
  0x2c   :  { %451 = vmatpush3.xpose.msk.msra.mxu0 %vm73_vm0, %v52_v11 }
  0x2d   :  { %452 = vmatprep.subr.msk.mxu0 %vm73_vm0, %v51_v12 }
  0x30   :  { %453 = vmatpush3.xpose.msk.msra.mxu0 %vm73_vm0, %v51_v12 }
  0x31   :  { %454 = vmatprep.subr.msk.mxu0 %vm73_vm0, %v50_v13 }
  0x34   :  { %455 = vmatpush3.xpose.msk.msra.mxu0 %vm73_vm0, %v50_v13 }
  0x35   :  { %456 = vmatprep.subr.msk.mxu0 %vm73_vm0, %v49_v14 }
  0x38   :  { %457 = vmatpush3.xpose.msk.msra.mxu0 %vm73_vm0, %v49_v14 }
  0x39   :  { %458 = vmatprep.subr.msk.mxu0 %vm73_vm0, %v48_v15 }
  0x3c   :  { %459 = vmatpush3.xpose.msk.msra.mxu0 %vm73_vm0, %v48_v15 }
  0x3d   :  { %460 = vmatprep.subr.msk.mxu0 %vm73_vm0, %v47_v16 }
  0x40   :  { %461 = vmatpush3.xpose.msk.msra.mxu0 %vm73_vm0, %v47_v16 }
  0x41   :  { %462 = vmatprep.subr.msk.mxu0 %vm73_vm0, %v46_v17 }
  0x44   :  { %463 = vmatpush3.xpose.msk.msra.mxu0 %vm73_vm0, %v46_v17 }
  0x45   :  { %464 = vmatprep.subr.msk.mxu0 %vm73_vm0, %v45_v18 }
  0x48   :  { %465 = vmatpush3.xpose.msk.msra.mxu0 %vm73_vm0, %v45_v18 }
  0x49   :  { %466 = vmatprep.subr.msk.mxu0 %vm73_vm0, %v44_v19 }
  0x4c   :  { %467 = vmatpush3.xpose.msk.msra.mxu0 %vm73_vm0, %v44_v19 }
  0x4d   :  { %468 = vmatprep.subr.msk.mxu0 %vm73_vm0, %v43_v20 }
  0x50   :  { %469 = vmatpush3.xpose.msk.msra.mxu0 %vm73_vm0, %v43_v20 }
  0x53   :  { %471 = vmatmul.mubr.msk.f32.vlgmr.msra.gmra.mxu0 %vm73_vm0, %v60_v21 }
  0x90   :  { %v71_v25 = vpop.permute.xlu0 %70 }
  0x94   :  { %v66_v28 = vpop.permute.xlu0 %65 }
  0x95   :  { %v210_v34 = vpop.permute.xlu1 %209 }
  0x99   :  { %v292_v43 = vpop.permute.xlu1 %291 }
  0x9a   :  { %v297_v44 = vrot.slane %v292_v43, %v296_v42 }
 0x113   :  { %v472_v26 = vpop.f32.mrf.mxu0 }
 0x114   :  { %v200_v27 = vadd.f32 %v472_v26, %v71_v25 }
 0x115   :  { %v194_v29 = vpop.f32.mrf.mxu0 }
 0x116   :  { %v204_v30 = vmax.f32 %v200_v27, 0.0  ;;  %v195_v31 = vadd.f32 %v194_v29, %v66_v28 }
 0x118   :  { %v203_v32 = vmax.f32 %v195_v31, 0.0  ;;  %474 = vmatpush3.msra.mxu1 %v204_v30 }
 0x119   :  { %475 = vmatprep.subr.mxu1 %v546_v22 }
 0x11a   :  { %476 = vmatpush3.msra.mxu1 %v203_v32 }
 0x11b   :  { %478 = vmatmul.mubr.msk.f32.vlgmr.msra.gmra.mxu1 %vm212_vm2, %v205_v33  ;;  %480 = vmatprep.subr.mxu1 %v546_v22 }
 0x11c   :  { %482 = vmatprep.mubr.msk.f32.mxu1 %vm547_vm1, %v546_v22 }
 0x1db   :  { %v282_v35 = vpop.f32.mrf.mxu1 }
 0x1dc   :  { %v283_v36 = vadd.f32 %v282_v35, %v210_v34 }
 0x1dd   :  { %v479_v37 = vpop.f32.mrf.mxu1 }
 0x1de   :  { %v286_v38 = vmax.f32 %v283_v36, 0.0 }
 0x1e0   :  { %481 = vmatpush3.msra.mxu1 %v286_v38 }
 0x1e1   :  { %483 = vmatmul.mubr.msk.f32.vlgmr.msra.gmra.mxu1 %vm298_vm3, %v287_v39 }
 0x2a1   :  { %v368_v45 = vpop.f32.mrf.mxu1 }
 0x2a2   :  { %v369_v46 = vadd.f32 %v368_v45, %v297_v44 }
 0x2a3   :  { %v484_v47 = vpop.f32.mrf.mxu1 }
 0x2a4   :  { %v414_v48 = vmul.f32 -1.442695, %v369_v46 }
 0x2a6   :  { %494 = vpow2.f32 %v414_v48 }
 0x2b3   :  { %v495_v49 = vpop.eup %494 }
 0x2b4   :  { %v375_v50 = vadd.f32 1.0, %v495_v49 }
 0x2b6   :  { %496 = vrcp.f32 %v375_v50 }
 0x2c3   :  { %v497_v51 = vpop.eup %496 }
 0x2c4   :  { %378 = vst [vmem:[#allocation6] sm:$0x1] %v497_v51 }
 0x2c5   :  { %529 = shalt.err (!%p526_p9)
}
 0x2c6   :  { %388 = dma.vmem_to_hbm [thread:$0]  %s386_s22, 16, %s704_s7, [#allocation5]  }
 0x2c7   :  { %540 = dma.done.wait [#allocation5], 16  }
 0x2c8   :  { %541 = vsyncadd [#allocation5], 4294967280 }
 0x2c9   :  { %392 = vsyncpa [#allocation4], 1 }
 0x2ca   :  { %393 = vsyncpa [#allocation5], 1 }

</bundles_post_ra>
